<compile_context>
chip_gen: v7x
topology: tpu7x:2x2x1
jax: 0.10.0
libtpu: 0.0.40
codegen_flags: <defaults>
</compile_context>

<pallas_src>
import functools

import jax
import jax.numpy as jnp
from jax.experimental import pallas as pl
from jax.experimental.pallas import tpu as pltpu

_EPS = 1e-5                 # nn.InstanceNorm2d default eps
_LANE = 128
_SUBLANE = 8
_MAX_ROW_BLOCK = 4096


def _round_up(v, m):
    return (v + m - 1) // m * m


def _vmem_limit_bytes():
    """Scoped-VMEM limit for this kernel: half of physical, capped at 64 MiB.

    v5e/v6e: 128 MiB physical -> 64 MiB.  v7x: 64 MiB physical -> 32 MiB.
    """
    try:
        cap = int(pltpu.get_tpu_info().vmem_capacity_bytes)
    except Exception:
        cap = 64 * 1024 * 1024
    return int(min(cap // 2, 64 * 1024 * 1024))


def _num_tensorcores():
    """TensorCores a single Pallas grid can shard across (2 on v7x/megacore)."""
    try:
        kind = jax.devices()[0].device_kind.lower()
    except Exception:
        return 1
    if "v7" in kind or "v4" in kind or "v5p" in kind:
        return 2
    return 1


def _choose_row_block(nc, hw, dtype_bytes):
    """Pick the row-tile height and the VMEM limit to compile with.

    Budgets (per grid step, double-buffered where the pipeline does so):
      * x in block + out block:       2 * 2 * row_block * lane_pad(HW) * itemsize
      * factor/bias (row_block, 2):   2 * row_block * 128 * 4   (lane-padded)
      * in-kernel f32 temporaries:    {2,3} * row_block * lane_pad(HW) * 4
    """
    vmem_limit = _vmem_limit_bytes()

    if nc <= _SUBLANE:
        # Full-extent row block (legal even if nc is not a multiple of 8).
        return nc, vmem_limit

    hw_lp = _round_up(hw, _LANE)            # lane-padded row width in VMEM
    nc_up = _round_up(nc, _SUBLANE)

    budget = (vmem_limit * 3) // 4          # headroom for sems / internal scratch

    io_row = hw_lp * dtype_bytes            # one row of the x (or out) block
    fb_row = _LANE * 4                      # (row, 2) f32 block lane-pads to 128
    n_temps = 3 if dtype_bytes < 4 else 2   # cast copy only for sub-32-bit dtypes
    temp_row = n_temps * hw_lp * 4
    per_row = 2 * (2 * io_row + fb_row) + temp_row   # 2x = pipeline double-buffer

    rows = budget // max(per_row, 1)
    rows = max(_SUBLANE, (rows // _SUBLANE) * _SUBLANE)
    rows = min(rows, _MAX_ROW_BLOCK, nc_up)

    # Balance the grid across TensorCores (v7x has 2 per chip): make the step
    # count a multiple of the core count with (nearly) equal-sized row blocks.
    # Single-core chips keep the largest block (possibly a single grid step).
    ncores = _num_tensorcores()
    if ncores > 1:
        steps = pl.cdiv(nc_up, rows)
        steps = _round_up(steps, ncores)
        rows = min(rows, _round_up(pl.cdiv(nc_up, steps), _SUBLANE))
        rows = max(rows, _SUBLANE)

    return rows, vmem_limit


def _cond_in_kernel(x_ref, p_ref, o_ref, *, hw, eps):
    # x_ref: (R, HW), p_ref: (R, 2) = [factor, bias], o_ref: (R, HW).
    x = x_ref[...].astype(jnp.float32)
    inv_hw = 1.0 / float(hw)

    # Two-pass variance: mean first, then centered sum of squares. The row is
    # already resident in VMEM, so the second pass is VPU-only and hidden under
    # the HBM-bound pipeline; avoids E[x^2]-mean^2 cancellation.
    mean = jnp.sum(x, axis=-1, keepdims=True) * inv_hw
    xc = x - mean
    var = jnp.sum(xc * xc, axis=-1, keepdims=True) * inv_hw
    inv = jax.lax.rsqrt(var + eps)

    p = p_ref[...].astype(jnp.float32)
    factor = p[:, 0:1]
    bias = p[:, 1:2]
    scale = inv * factor                              # per-row scalar
    o_ref[...] = (xc * scale + bias).astype(o_ref.dtype)


def conditional_instance_norm2d(x, param, eps=_EPS):
    """x: (N, C, H, W); param: (N, 2*C, 1, 1). Returns (N, C, H, W)."""
    N, C, H, W = x.shape
    assert param.shape == (N, 2 * C, 1, 1), param.shape

    NC = N * C
    HW = H * W
    itemsize = jnp.dtype(x.dtype).itemsize

    factor = param[:, :C, 0, 0].reshape(NC)
    bias = param[:, C:, 0, 0].reshape(NC)
    fb = jnp.stack([factor, bias], axis=-1).astype(jnp.float32)   # (NC, 2), tiny

    x2 = x.reshape(NC, HW)

    row_block, vmem_limit = _choose_row_block(NC, HW, itemsize)
    grid = (pl.cdiv(NC, row_block),)

    kernel = functools.partial(_cond_in_kernel, hw=HW, eps=eps)

    cost = pl.CostEstimate(
        flops=6 * NC * HW,
        transcendentals=NC,
        bytes_accessed=2 * NC * HW * itemsize + NC * 2 * 4,
    )

    out = pl.pallas_call(
        kernel,
        out_shape=jax.ShapeDtypeStruct((NC, HW), x.dtype),
        grid_spec=pltpu.PrefetchScalarGridSpec(
            num_scalar_prefetch=0,
            grid=grid,
            in_specs=[
                # Full-extent last dim: legal even when HW % 128 != 0, and it
                # avoids any host-side pad/slice round trips through HBM.
                pl.BlockSpec((row_block, HW), lambda i: (i, 0)),
                pl.BlockSpec((row_block, 2), lambda i: (i, 0)),
            ],
            out_specs=pl.BlockSpec((row_block, HW), lambda i: (i, 0)),
        ),
        compiler_params=pltpu.CompilerParams(
            dimension_semantics=("parallel",),
            vmem_limit_bytes=vmem_limit,
        ),
        cost_estimate=cost,
    )(x2, fb)

    return out.reshape(N, C, H, W)


def _reference(x, param):
    N, C, H, W = x.shape
    factor = param[:, :C]           # (N, C, 1, 1)
    bias = param[:, C:]             # (N, C, 1, 1)
    mean = jnp.mean(x, axis=(2, 3), keepdims=True)
    var = jnp.mean((x - mean) ** 2, axis=(2, 3), keepdims=True)
    xn = (x - mean) / jnp.sqrt(var + _EPS)
    return xn * factor + bias


if __name__ == "__main__":
    key = jax.random.PRNGKey(0)
    kx, kp = jax.random.split(key)

    N, C, H, W = 2, 4, 16, 16
    x = jax.random.normal(kx, (N, C, H, W), dtype=jnp.float32)
    # param plays the role of a conditioning vector (e.g. from a style MLP);
    # initialized deterministically here.
    param = jax.random.normal(kp, (N, 2 * C, 1, 1), dtype=jnp.float32)

    out = conditional_instance_norm2d(x, param)
    out = jax.block_until_ready(out)

    ref = _reference(x, param)
    assert out.shape == (N, C, H, W)
    assert jnp.max(jnp.abs(out - ref)) < 1e-4, float(jnp.max(jnp.abs(out - ref)))

    print("KERNEL_OK")
</pallas_src>

<mosaic_0001>
module attributes {stable_mosaic.version = 11 : i64} {
  func.func @_cond_in_kernel(%arg0: i32, %arg1: memref<8x256xf32, #tpu.memory_space<vmem>>, %arg2: memref<8x2xf32, #tpu.memory_space<vmem>>, %arg3: memref<8x256xf32, #tpu.memory_space<vmem>>) attributes {dimension_semantics = [#tpu.dimension_semantics<parallel>], iteration_bounds = array<i64: 1>, scalar_prefetch = 0 : i64, scratch_operands = 0 : i64, tpu.core_type = #tpu.core_type<tc>, window_params = [{transform_indices = @transform_0, window_bounds = array<i64: 8, 256>}, {transform_indices = @transform_1, window_bounds = array<i64: 8, 2>}, {transform_indices = @transform_2, window_bounds = array<i64: 8, 256>}]} {
    %c0 = arith.constant 0 : index
    %c0_0 = arith.constant 0 : index
    %0 = vector.load %arg1[%c0, %c0_0] : memref<8x256xf32, #tpu.memory_space<vmem>>, vector<8x256xf32>
    %cst = arith.constant dense<0.000000e+00> : vector<8xf32>
    %1 = vector.multi_reduction <add>, %0, %cst [1] : vector<8x256xf32> to vector<8xf32>
    %2 = vector.shape_cast %1 : vector<8xf32> to vector<8x1xf32>
    %cst_1 = arith.constant 3.906250e-03 : f32
    %3 = vector.broadcast %cst_1 : f32 to vector<8x1xf32>
    %4 = arith.mulf %2, %3 : vector<8x1xf32>
    %5 = vector.broadcast %4 : vector<8x1xf32> to vector<8x256xf32>
    %6 = arith.subf %0, %5 : vector<8x256xf32>
    %7 = arith.mulf %6, %6 : vector<8x256xf32>
    %cst_2 = arith.constant dense<0.000000e+00> : vector<8xf32>
    %8 = vector.multi_reduction <add>, %7, %cst_2 [1] : vector<8x256xf32> to vector<8xf32>
    %9 = vector.shape_cast %8 : vector<8xf32> to vector<8x1xf32>
    %cst_3 = arith.constant 3.906250e-03 : f32
    %10 = vector.broadcast %cst_3 : f32 to vector<8x1xf32>
    %11 = arith.mulf %9, %10 : vector<8x1xf32>
    %cst_4 = arith.constant 9.99999974E-6 : f32
    %12 = vector.broadcast %cst_4 : f32 to vector<8x1xf32>
    %13 = arith.addf %11, %12 : vector<8x1xf32>
    %14 = math.rsqrt %13 : vector<8x1xf32>
    %c0_5 = arith.constant 0 : index
    %c0_6 = arith.constant 0 : index
    %15 = vector.load %arg2[%c0_5, %c0_6] : memref<8x2xf32, #tpu.memory_space<vmem>>, vector<8x2xf32>
    %16 = vector.extract_strided_slice %15 {offsets = [0, 0], sizes = [8, 1], strides = [1, 1]} : vector<8x2xf32> to vector<8x1xf32>
    %17 = vector.extract_strided_slice %15 {offsets = [0, 1], sizes = [8, 1], strides = [1, 1]} : vector<8x2xf32> to vector<8x1xf32>
    %18 = arith.mulf %14, %16 : vector<8x1xf32>
    %19 = vector.broadcast %18 : vector<8x1xf32> to vector<8x256xf32>
    %20 = arith.mulf %6, %19 : vector<8x256xf32>
    %21 = vector.broadcast %17 : vector<8x1xf32> to vector<8x256xf32>
    %22 = arith.addf %20, %21 : vector<8x256xf32>
    %c0_7 = arith.constant 0 : index
    %c0_8 = arith.constant 0 : index
    %23 = vector.load %arg3[%c0_7, %c0_8] : memref<8x256xf32, #tpu.memory_space<vmem>>, vector<8x256xf32>
    tpu.vector_store %arg3[%c0_7, %c0_8], %22 {strides = array<i32>} : memref<8x256xf32, #tpu.memory_space<vmem>>, vector<8x256xf32>,
    return
  }
  func.func @transform_0(%arg0: i32) -> (i32, i32) {
    %c0_i32 = arith.constant 0 : i32
    %c0_i32_0 = arith.constant 0 : i32
    return %arg0, %c0_i32 : i32, i32
  }
  func.func @transform_1(%arg0: i32) -> (i32, i32) {
    %c0_i32 = arith.constant 0 : i32
    %c0_i32_0 = arith.constant 0 : i32
    return %arg0, %c0_i32 : i32, i32
  }
  func.func @transform_2(%arg0: i32) -> (i32, i32) {
    %c0_i32 = arith.constant 0 : i32
    %c0_i32_0 = arith.constant 0 : i32
    return %arg0, %c0_i32 : i32, i32
  }
}

</mosaic_0001>

<bundles_post_ra>
// kernel: tpu_custom_call.1
= control target key start
LH: loop header
LB: loop body
LE: loop exit
PB: predicated region body
PF: predicated region fallthrough
CT: control target
= control target key end

     0   :  { %7 = vsyncpa [#allocation3], 0  ;;  %s176_s0 = inlined_call_operand.hbm [shape: f32[8,256], index: 0, kind: input, shape index: {}]   ;;  %s177_s1 = inlined_call_operand.vmem [shape: f32[8,2], index: 1, kind: input, shape index: {}]   ;;  %s178_s2 = inlined_call_operand.hbm [shape: f32[8,256], index: 2, kind: output, shape index: {}]  }
   0x1   :  { %8 = vsyncpa [#allocation4], 0  ;;  %s130_s9 = smov [#allocation2]   ;;  %s82_s13 = scalar_lea.hbm %s176_s0, 256 }
   0x2   :  { %s15_s10 = sshll.u32 %s130_s9, 4  ;;  %p83_p0 = scmp.ne.s32.totalorder %s176_s0, %s82_s13  ;;  %s16_s10 = int_to_ptr.vmem [resolvable:$true] %s15_s10 }
   0x3   :  { %p86_p1 = scmp.lt.u32.totalorder %s82_s13, %s176_s0 }
   0x5   :  { %p88_p2 = pnand %p86_p1, %p83_p0 }
   0x7   :  { %91 = shalt.err (!%p88_p2)
}
   0x8   :  { %s92_s18 = scalar_lea.vmem %s16_s10, 256  ;;  %p97_p4 = scmp.lt.s32.totalorder %s16_s10, %s16_s10 }
   0x9   :  { %p93_p3 = scmp.ne.s32.totalorder %s16_s10, %s92_s18  ;;  %p98_p5 = scmp.lt.s32.totalorder %s92_s18, %s92_s18 }
   0xb   :  { %p99_p6 = por %p98_p5, %p97_p4 }
   0xd   :  { %p100_p7 = pnand %p99_p6, %p93_p3 }
   0xf   :  { %103 = shalt.err (!%p100_p7)
}
  0x10   :  { %18 = dma.hbm_to_vmem [thread:$0]  %s176_s0, 256, %s16_s10, [#allocation3]  }
  0x11   :  { %126 = dma.done.wait [#allocation3], 256  }
  0x12   :  { %127 = vsyncadd [#allocation3], 4294967040  ;;  %v24_v0 = vld [vmem:[#allocation2] sm:$0xff]  ;;  %v25_v1 = vld [vmem:[#allocation2 + $0x8] sm:$0xff]  ;;  %v131_v10 = vmov 0   ;;  %v132_v11 = vmov 1  }
  0x13   :  { %v26_v2 = vadd.f32 %v25_v1, %v24_v0  ;;  %77 = vset.pattern.permute.xlu1 %v131_v10  ;;  %79 = vset.pattern.permute.xlu0 %v132_v11  ;;  %v40_v15 = vld [vmem:[%s177_s1] sm:$0xff]  ;;  %s133_s22 = smov [#allocation5]  }
  0x14   :  { %s64_s23 = sshll.u32 %s133_s22, 4  ;;  %s65_s23 = int_to_ptr.vmem [resolvable:$true] %s64_s23 }
  0x15   :  { %27 = vadd.xlane.f32.xlu0 %v26_v2  ;;  %s104_s24 = scalar_lea.vmem %s65_s23, 256  ;;  %p109_p9 = scmp.lt.s32.totalorder %s65_s23, %s65_s23 }
  0x16   :  { %p105_p8 = scmp.ne.s32.totalorder %s65_s23, %s104_s24  ;;  %p110_p10 = scmp.lt.s32.totalorder %s104_s24, %s104_s24 }
  0x18   :  { %p111_p11 = por %p110_p10, %p109_p9 }
  0x1a   :  { %p112_p12 = pnand %p111_p11, %p105_p8 }
  0xa2   :  { %v28_v3 = vpop.xlane.xlu0 %27 }
  0xa3   :  { %v29_v4 = vmul.f32 0.00390625, %v28_v3 }
  0xa5   :  { %v30_v5 = vsub.f32 %v24_v0, %v29_v4  ;;  %v31_v6 = vsub.f32 %v25_v1, %v29_v4 }
  0xa7   :  { %v32_v7 = vmul.f32 %v30_v5, %v30_v5  ;;  %v33_v8 = vmul.f32 %v31_v6, %v31_v6 }
  0xa9   :  { %v34_v9 = vadd.f32 %v33_v8, %v32_v7 }
  0xab   :  { %35 = vadd.xlane.f32.xlu0 %v34_v9 }
 0x138   :  { %v36_v12 = vpop.xlane.xlu0 %35 }
 0x139   :  { %v37_v13 = vmul.f32 0.00390625, %v36_v12 }
 0x13b   :  { %v38_v14 = vadd.f32 1e-05, %v37_v13 }
 0x13d   :  { %80 = vrsqrt.f32 %v38_v14 }
 0x147   :  { %v81_v16 = vpop.eup %80 }
 0x148   :  { %v41_v17 = vmul.f32 %v81_v16, %v40_v15 }
 0x14a   :  { %44 = vperm.xlu1 %77, %v41_v17  }
 0x14e   :  { %78 = vset.pattern.permute.xlu1 %v132_v11 }
 0x14f   :  { %51 = vperm.xlu1 %78, %v40_v15  }
 0x1c9   :  { %v45_v18 = vpop.permute.xlu1 %44 }
 0x1ca   :  { %v47_v19 = vmul.f32 %v45_v18, %v30_v5  ;;  %v48_v20 = vmul.f32 %v45_v18, %v31_v6 }
 0x1ce   :  { %v52_v21 = vpop.permute.xlu1 %51 }
 0x1cf   :  { %v54_v22 = vadd.f32 %v52_v21, %v47_v19  ;;  %v55_v23 = vadd.f32 %v52_v21, %v48_v20 }
 0x1d1   :  { %56 = vst [vmem:[#allocation5] sm:$0xff] %v54_v22  ;;  %57 = vst [vmem:[#allocation5 + $0x8] sm:$0xff] %v55_v23 }
 0x1d2   :  { %115 = shalt.err (!%p112_p12)
}
 0x1d3   :  { %s116_s26 = scalar_lea.hbm %s178_s2, 256 }
 0x1d4   :  { %p117_p13 = scmp.ne.s32.totalorder %s178_s2, %s116_s26  ;;  %p120_p0 = scmp.lt.u32.totalorder %s116_s26, %s178_s2 }
 0x1d6   :  { %p122_p1 = pnand %p120_p0, %p117_p13 }
 0x1d8   :  { %125 = shalt.err (!%p122_p1)
}
 0x1d9   :  { %67 = dma.vmem_to_hbm [thread:$0]  %s65_s23, 256, %s178_s2, [#allocation4]  }
 0x1da   :  { %128 = dma.done.wait [#allocation4], 256  }
 0x1db   :  { %129 = vsyncadd [#allocation4], 4294967040 }
 0x1dc   :  { %71 = vsyncpa [#allocation3], 1 }
 0x1dd   :  { %72 = vsyncpa [#allocation4], 1 }

</bundles_post_ra>
